<compile_context>
chip_gen: v6e
topology: v6e:2x2x1
jax: 0.10.0
libtpu: 0.0.40
codegen_flags: <defaults>
</compile_context>

<pallas_src>
import jax
import jax.numpy as jnp
from jax.experimental import pallas as pl
from jax.experimental.pallas import tpu as pltpu


# ----------------------------------------------------------------------------
# Pallas kernel: blocked separable crop-and-resize  out[b] = Wy @ img[b] @ Wx^T
# ----------------------------------------------------------------------------
def _crop_resize_kernel(wy_ref, wxt_ref, x_ref, o_ref):
    BT, H, W = x_ref.shape
    ch = wy_ref.shape[0]
    cw = wxt_ref.shape[1]

    blk = x_ref[...].astype(jnp.bfloat16)            # (BT, H, W)
    wxt = wxt_ref[...].astype(jnp.bfloat16)          # (W, cw)   pre-transposed Wx
    wy = wy_ref[...].astype(jnp.bfloat16)            # (ch, H)

    # Pass 1 (W-contraction): one large MXU matmul with M = BT*H.
    t = jnp.dot(blk.reshape(BT * H, W), wxt,
                preferred_element_type=jnp.float32)  # (BT*H, cw) f32
    t = t.reshape(BT, H, cw).astype(jnp.bfloat16)    # (BT, H, cw)

    # Pass 2 (H-contraction): batched matmul over the image block
    # (same pattern as the standard 'bqk,bkd->bqd' attention einsum).
    wy_b = jnp.broadcast_to(wy[None, :, :], (BT, ch, H))
    out = jnp.einsum("bch,bhw->bcw", wy_b, t,
                     preferred_element_type=jnp.float32)   # (BT, ch, cw) f32

    o_ref[...] = out.astype(o_ref.dtype)


def _choose_block_images(nc, h, w, itemsize, target_block_bytes=2 << 20):
    """Images per grid step: ~2 MiB input blocks, double-buffered in/out plus
    in-kernel temporaries stays well under the 32 MiB VMEM limit requested below
    (and under v7x's 64 MiB physical VMEM)."""
    bt = max(1, target_block_bytes // (h * w * itemsize))
    bt = int(min(bt, nc, 1024))
    if bt >= 8:
        bt = (bt // 8) * 8      # sublane-friendly reshape boundaries
    return max(bt, 1)


def crop_resize_pallas(x, wy, wx):
    """x: (N, C, H, W); wy: (crop_h, H); wx: (crop_w, W) -> (N, C, crop_h, crop_w)."""
    N, C, H, W = x.shape
    ch = wy.shape[0]
    cw = wx.shape[0]
    nc = N * C

    xb = x.reshape(nc, H, W)
    wxt = wx.T                                   # transpose once on the host side

    bt = _choose_block_images(nc, H, W, x.dtype.itemsize)
    n_blocks = -(-nc // bt)
    ncp = n_blocks * bt
    if ncp != nc:
        xb = jnp.pad(xb, ((0, ncp - nc), (0, 0), (0, 0)))

    out = pl.pallas_call(
        _crop_resize_kernel,
        out_shape=jax.ShapeDtypeStruct((ncp, ch, cw), x.dtype),
        grid_spec=pltpu.PrefetchScalarGridSpec(
            num_scalar_prefetch=0,
            grid=(n_blocks,),
            in_specs=[
                pl.BlockSpec((ch, H), lambda b: (0, 0)),       # Wy   (shared)
                pl.BlockSpec((W, cw), lambda b: (0, 0)),       # Wx^T (shared)
                pl.BlockSpec((bt, H, W), lambda b: (b, 0, 0)),  # BT images
            ],
            out_specs=pl.BlockSpec((bt, ch, cw), lambda b: (b, 0, 0)),
        ),
        compiler_params=pltpu.CompilerParams(
            dimension_semantics=("parallel",),        # shards across TCs on v7x
            vmem_limit_bytes=32 * 1024 * 1024,        # <= physical on v5e/v6e/v7x
        ),
    )(wy, wxt, xb)
    return out[:nc].reshape(N, C, ch, cw)


# ----------------------------------------------------------------------------
# Glue: bicubic sampling-matrix construction + deterministic augmentation params
# ----------------------------------------------------------------------------
def _cubic_weight(t, a=-0.75):
    """PyTorch/kornia bicubic convolution kernel (Keys, a=-0.75)."""
    at = jnp.abs(t)
    w1 = ((a + 2.0) * at - (a + 3.0)) * at * at + 1.0
    w2 = ((a * at - 5.0 * a) * at + 8.0 * a) * at - 4.0 * a
    return jnp.where(at <= 1.0, w1, jnp.where(at < 2.0, w2, 0.0))


def _bicubic_matrix(out_size, in_size, src_start, src_len):
    """Dense (out_size, in_size) bicubic interpolation matrix.

    Destination pixel i samples source coord  src_start + (i + 0.5)*scale - 0.5
    (align_corners=False convention)."""
    scale = src_len / out_size
    i = jnp.arange(out_size, dtype=jnp.float32)
    s = src_start + (i + 0.5) * scale - 0.5
    fs = jnp.floor(s)
    t = s - fs                                                        # frac in [0,1)
    offs = jnp.arange(-1, 3, dtype=jnp.float32)                       # 4 taps
    idx = fs[:, None].astype(jnp.int32) + offs[None, :].astype(jnp.int32)
    w = _cubic_weight(t[:, None] - offs[None, :])                     # (out, 4)
    idx_c = jnp.clip(idx, 0, in_size - 1)                             # border clamp
    mat = jnp.zeros((out_size, in_size), jnp.float32)
    mat = mat.at[jnp.arange(out_size)[:, None], idx_c].add(w)
    return mat


def augmentations_forward(x, stage=None, *, crop_size, rng_key):
    """Pallas-backed equivalent of Augmentations.forward (deterministic RNG)."""
    N, C, H, W = x.shape
    ch, cw = crop_size

    if stage is None or stage == "train":
        # --- RandomResizedCrop(scale=(0.2, 1.0), ratio=(3/4, 4/3)) -----------
        k_scale, k_ratio, k_top, k_left, k_flip = jax.random.split(rng_key, 5)
        area = H * W * jax.random.uniform(k_scale, (), minval=0.2, maxval=1.0)
        log_r = jax.random.uniform(k_ratio, (),
                                   minval=jnp.log(3.0 / 4.0),
                                   maxval=jnp.log(4.0 / 3.0))
        ratio = jnp.exp(log_r)
        box_w = jnp.clip(jnp.sqrt(area * ratio), 1.0, float(W))
        box_h = jnp.clip(jnp.sqrt(area / ratio), 1.0, float(H))
        top = jax.random.uniform(k_top, ()) * (H - box_h)
        left = jax.random.uniform(k_left, ()) * (W - box_w)
        wy = _bicubic_matrix(ch, H, top, box_h)
        wx = _bicubic_matrix(cw, W, left, box_w)
        # --- RandomHorizontalFlip(p=0.5) — fold into Wx by reversing rows ----
        do_flip = jax.random.uniform(k_flip, ()) < 0.5
        wx = jnp.where(do_flip, wx[::-1, :], wx)
    else:
        # --- CenterCrop(crop_size) -------------------------------------------
        top = (H - ch) / 2.0
        left = (W - cw) / 2.0
        wy = _bicubic_matrix(ch, H, jnp.float32(top), jnp.float32(ch))
        wx = _bicubic_matrix(cw, W, jnp.float32(left), jnp.float32(cw))

    return crop_resize_pallas(x, wy, wx)


# ----------------------------------------------------------------------------
if __name__ == "__main__":
    key = jax.random.PRNGKey(0)
    k_x, k_aug = jax.random.split(key)

    # small shapes consistent with the module: image_size=(16,16), crop_size=(8,8)
    N, C, H, W = 2, 4, 16, 16
    crop_size = (8, 8)
    x = jax.random.normal(k_x, (N, C, H, W), dtype=jnp.float32)

    out_train = augmentations_forward(x, stage=None, crop_size=crop_size, rng_key=k_aug)
    out_test = augmentations_forward(x, stage="test", crop_size=crop_size, rng_key=k_aug)

    jax.block_until_ready(out_train)
    jax.block_until_ready(out_test)

    assert out_train.shape == (N, C, *crop_size)
    assert out_test.shape == (N, C, *crop_size)
    print("KERNEL_OK")
</pallas_src>

<mosaic_0001>
module attributes {stable_mosaic.version = 11 : i64} {
  func.func @_crop_resize_kernel(%arg0: i32, %arg1: memref<8x16xf32, #tpu.memory_space<vmem>>, %arg2: memref<16x8xf32, #tpu.memory_space<vmem>>, %arg3: memref<8x16x16xf32, #tpu.memory_space<vmem>>, %arg4: memref<8x8x8xf32, #tpu.memory_space<vmem>>) attributes {dimension_semantics = [#tpu.dimension_semantics<parallel>], iteration_bounds = array<i64: 1>, scalar_prefetch = 0 : i64, scratch_operands = 0 : i64, tpu.core_type = #tpu.core_type<tc>, window_params = [{pipeline_mode = #tpu.pipeline_mode<synchronous>, transform_indices = @transform_0, window_bounds = array<i64: 8, 16>}, {pipeline_mode = #tpu.pipeline_mode<synchronous>, transform_indices = @transform_1, window_bounds = array<i64: 16, 8>}, {transform_indices = @transform_2, window_bounds = array<i64: 8, 16, 16>}, {transform_indices = @transform_3, window_bounds = array<i64: 8, 8, 8>}]} {
    %c0 = arith.constant 0 : index
    %c0_0 = arith.constant 0 : index
    %c0_1 = arith.constant 0 : index
    %0 = vector.load %arg3[%c0, %c0_0, %c0_1] : memref<8x16x16xf32, #tpu.memory_space<vmem>>, vector<8x16x16xf32>
    %1 = arith.truncf %0 : vector<8x16x16xf32> to vector<8x16x16xbf16>
    %c0_2 = arith.constant 0 : index
    %c0_3 = arith.constant 0 : index
    %2 = vector.load %arg2[%c0_2, %c0_3] : memref<16x8xf32, #tpu.memory_space<vmem>>, vector<16x8xf32>
    %3 = arith.truncf %2 : vector<16x8xf32> to vector<16x8xbf16>
    %c0_4 = arith.constant 0 : index
    %c0_5 = arith.constant 0 : index
    %4 = vector.load %arg1[%c0_4, %c0_5] : memref<8x16xf32, #tpu.memory_space<vmem>>, vector<8x16xf32>
    %5 = arith.truncf %4 : vector<8x16xf32> to vector<8x16xbf16>
    %6 = vector.shape_cast %1 : vector<8x16x16xbf16> to vector<128x16xbf16>
    %cst = arith.constant dense<0.000000e+00> : vector<128x8xf32>
    %7 = tpu.matmul %6, %3, %cst {dimension_numbers = #tpu.dot_dimension_numbers<[1], [0], [0], [1], [0, 0, 1, 1], [], []>} : vector<128x16xbf16>, vector<16x8xbf16>, vector<128x8xf32> -> vector<128x8xf32>
    %8 = vector.shape_cast %7 : vector<128x8xf32> to vector<8x16x8xf32>
    %9 = arith.truncf %8 : vector<8x16x8xf32> to vector<8x16x8xbf16>
    %10 = vector.shape_cast %5 : vector<8x16xbf16> to vector<1x8x16xbf16>
    %11 = vector.shape_cast %10 : vector<1x8x16xbf16> to vector<1x8x16xbf16>
    %12 = vector.broadcast %11 : vector<1x8x16xbf16> to vector<8x8x16xbf16>
    "tpu.trace_start"() <{level = 10 : i32, message = "bch,bhw->bcw"}> : () -> ()
    %cst_6 = arith.constant dense<0.000000e+00> : vector<8x8x8xf32>
    %13 = tpu.matmul %12, %9, %cst_6 {dimension_numbers = #tpu.dot_dimension_numbers<[2], [1], [1], [2], [0, 0, 0, 1, 1, 2], [0], [0]>} : vector<8x8x16xbf16>, vector<8x16x8xbf16>, vector<8x8x8xf32> -> vector<8x8x8xf32>
    "tpu.trace_stop"() : () -> ()
    %c0_7 = arith.constant 0 : index
    %c0_8 = arith.constant 0 : index
    %c0_9 = arith.constant 0 : index
    %14 = vector.load %arg4[%c0_7, %c0_8, %c0_9] : memref<8x8x8xf32, #tpu.memory_space<vmem>>, vector<8x8x8xf32>
    tpu.vector_store %arg4[%c0_7, %c0_8, %c0_9], %13 {strides = array<i32>} : memref<8x8x8xf32, #tpu.memory_space<vmem>>, vector<8x8x8xf32>,
    return
  }
  func.func @transform_0(%arg0: i32) -> (i32, i32) {
    %c0_i32 = arith.constant 0 : i32
    %c0_i32_0 = arith.constant 0 : i32
    %c0_i32_1 = arith.constant 0 : i32
    return %c0_i32, %c0_i32_0 : i32, i32
  }
  func.func @transform_1(%arg0: i32) -> (i32, i32) {
    %c0_i32 = arith.constant 0 : i32
    %c0_i32_0 = arith.constant 0 : i32
    %c0_i32_1 = arith.constant 0 : i32
    return %c0_i32, %c0_i32_0 : i32, i32
  }
  func.func @transform_2(%arg0: i32) -> (i32, i32, i32) {
    %c0_i32 = arith.constant 0 : i32
    %c0_i32_0 = arith.constant 0 : i32
    %c0_i32_1 = arith.constant 0 : i32
    return %arg0, %c0_i32, %c0_i32_0 : i32, i32, i32
  }
  func.func @transform_3(%arg0: i32) -> (i32, i32, i32) {
    %c0_i32 = arith.constant 0 : i32
    %c0_i32_0 = arith.constant 0 : i32
    %c0_i32_1 = arith.constant 0 : i32
    return %arg0, %c0_i32, %c0_i32_0 : i32, i32, i32
  }
}

</mosaic_0001>

<bundles_post_ra>
// kernel: tpu_custom_call.1
= control target key start
LH: loop header
LB: loop body
LE: loop exit
PB: predicated region body
PF: predicated region fallthrough
CT: control target
= control target key end

     0   :  { %8 = vsyncpa [#allocation3], 0  ;;  %s774_s0 = inlined_call_operand.vmem [shape: f32[8,16], index: 0, kind: input, shape index: {}]   ;;  %s775_s1 = inlined_call_operand.vmem [shape: f32[16,8], index: 1, kind: input, shape index: {}]   ;;  %s776_s2 = inlined_call_operand.hbm [shape: f32[8,16,16], index: 2, kind: input, shape index: {}]   ;;  %s777_s3 = inlined_call_operand.hbm [shape: f32[8,8,8], index: 3, kind: output, shape index: {}]  }
   0x1   :  { %9 = vsyncpa [#allocation4], 0  ;;  %s695_s12 = smov [#allocation2]  }
   0x2   :  { %s19_s13 = sshll.u32 %s695_s12, 4  ;;  %s20_s13 = int_to_ptr.vmem [resolvable:$true] %s19_s13 }
   0x3   :  { %s659_s14 = scalar_lea.vmem %s20_s13, 2048  ;;  %p664_p1 = scmp.lt.s32.totalorder %s20_s13, %s20_s13 }
   0x4   :  { %p660_p0 = scmp.ne.s32.totalorder %s20_s13, %s659_s14  ;;  %p665_p2 = scmp.lt.s32.totalorder %s659_s14, %s659_s14 }
   0x6   :  { %p666_p3 = por %p665_p2, %p664_p1 }
   0x8   :  { %p667_p4 = pnand %p666_p3, %p660_p0 }
   0xa   :  { %670 = shalt.err (!%p667_p4)
}
   0xb   :  { %s696_s15 = smov 128   ;;  %s697_s16 = smov 8  }
   0xc   :  { %25 = dma.hbm_to_vmem [thread:$0]  %s776_s2, 2048, %s20_s13, [#allocation3], %s696_s15, %s696_s15, %s697_s16  }
   0xd   :  { %691 = dma.done.wait [#allocation3], 2048  }
   0xe   :  { %692 = vsyncadd [#allocation3], 4294965248  ;;  %v54_v0 = vld [vmem:[%s775_s1] sm:$0xff]  ;;  %v55_v1 = vld [vmem:[%s775_s1 + $0x8] sm:$0xff]  ;;  %vm59_vm0 = vcmask 130048   ;;  %v698_v27 = vmov 0.0  }
   0xf   :  { %v30_v2 = vld [vmem:[#allocation2] sm:$0xff]  ;;  %v56_v3 = vpack.c.bf16 %v55_v1, %v54_v0  ;;  %v31_v4 = vld [vmem:[#allocation2 + $0x8] sm:$0xff]  ;;  %v32_v5 = vld [vmem:[#allocation2 + $0x10] sm:$0xff]  ;;  %597 = vmatprep.subr.bf16.mxu1 %v698_v27  ;;  %vm699_vm1 = vmmov 0   ;;  %vm512_vm2 = vcmask 64512  }
  0x10   :  { %v33_v6 = vld [vmem:[#allocation2 + $0x18] sm:$0xff]  ;;  %v46_v7 = vpack.c.bf16 %v31_v4, %v30_v2  ;;  %v34_v8 = vld [vmem:[#allocation2 + $0x20] sm:$0xff]  ;;  %v35_v9 = vld [vmem:[#allocation2 + $0x28] sm:$0xff]  ;;  %599 = vmatprep.mubr.msk.bf16.mxu1 %vm699_vm1, %v698_v27 }
  0x11   :  { %579 = vmatprep.subr.bf16.mxu0 %v56_v3  ;;  %v47_v10 = vpack.c.bf16 %v33_v6, %v32_v5  ;;  %v48_v11 = vpack.c.bf16 %v35_v9, %v34_v8  ;;  %v36_v12 = vld [vmem:[#allocation2 + $0x30] sm:$0xff]  ;;  %v37_v13 = vld [vmem:[#allocation2 + $0x38] sm:$0xff]  ;;  %v38_v14 = vld [vmem:[#allocation2 + $0x40] sm:$0xff] }
  0x12   :  { %580 = vmatpush3.bf16.msra.mxu0 %v56_v3  ;;  %581 = vmatprep.mubr.msk.bf16.mxu0 %vm59_vm0, %v46_v7  ;;  %v39_v15 = vld [vmem:[#allocation2 + $0x48] sm:$0xff]  ;;  %v49_v16 = vpack.c.bf16 %v37_v13, %v36_v12  ;;  %v40_v18 = vld [vmem:[#allocation2 + $0x50] sm:$0xff]  ;;  %v41_v19 = vld [vmem:[#allocation2 + $0x58] sm:$0xff] }
  0x13   :  { %v50_v17 = vpack.c.bf16 %v39_v15, %v38_v14  ;;  %v42_v20 = vld [vmem:[#allocation2 + $0x60] sm:$0xff]  ;;  %v43_v21 = vld [vmem:[#allocation2 + $0x68] sm:$0xff]  ;;  %v51_v22 = vpack.c.bf16 %v41_v19, %v40_v18  ;;  %v44_v24 = vld [vmem:[#allocation2 + $0x70] sm:$0xff]  ;;  %621 = vmatprep.subr.bf16.mxu0 %v698_v27 }
  0x14   :  { %v52_v23 = vpack.c.bf16 %v43_v21, %v42_v20  ;;  %v45_v25 = vld [vmem:[#allocation2 + $0x78] sm:$0xff]  ;;  %v57_v31 = vld [vmem:[%s774_s0] sm:$0xff]  ;;  %s700_s0 = smov [#allocation5]  }
  0x15   :  { %582 = vmatmul.mubr.msk.bf16.vlgmr.msra.gmra.mxu0 %vm59_vm0, %v47_v10  ;;  %v53_v26 = vpack.c.bf16 %v45_v25, %v44_v24  ;;  %v58_v35 = vpack.c.bf16 %v57_v31, %v57_v31  ;;  %s526_s23 = sshll.u32 %s700_s0, 4  ;;  %s527_s23 = int_to_ptr.vmem [resolvable:$true] %s526_s23 }
  0x16   :  { %585 = vmatprep.mubr.msk.bf16.mxu0 %vm59_vm0, %v48_v11  ;;  %s671_s24 = scalar_lea.vmem %s527_s23, 1024  ;;  %p676_p6 = scmp.lt.s32.totalorder %s527_s23, %s527_s23 }
  0x17   :  { %p672_p5 = scmp.ne.s32.totalorder %s527_s23, %s671_s24  ;;  %p677_p7 = scmp.lt.s32.totalorder %s671_s24, %s671_s24 }
  0x19   :  { %p678_p8 = por %p677_p7, %p676_p6 }
  0x1b   :  { %p679_p9 = pnand %p678_p8, %p672_p5 }
  0x1d   :  { %586 = vmatmul.mubr.msk.bf16.gmra.mxu0 %vm59_vm0, %v49_v16 }
  0x1e   :  { %589 = vmatprep.mubr.msk.bf16.mxu0 %vm59_vm0, %v50_v17 }
  0x25   :  { %590 = vmatmul.mubr.msk.bf16.gmra.mxu0 %vm59_vm0, %v51_v22 }
  0x26   :  { %593 = vmatprep.mubr.msk.bf16.mxu0 %vm59_vm0, %v52_v23 }
  0x2d   :  { %594 = vmatmul.mubr.msk.bf16.gmra.mxu0 %vm59_vm0, %v53_v26 }
  0x2e   :  { %623 = vmatprep.mubr.msk.bf16.mxu0 %vm699_vm1, %v698_v27 }
  0xd5   :  { %v583_v28 = vpop.f32.mrf.mxu0 }
  0xd7   :  { %v118_v29 = vpop.f32.mrf.mxu0 }
  0xd9   :  { %v584_v30 = vpop.f32.mrf.mxu0 }
  0xda   :  { %v182_v37 = vpack.c.bf16 %v584_v30, %v583_v28 }
  0xdb   :  { %v121_v32 = vpop.f32.mrf.mxu0 }
  0xdc   :  { %v181_v33 = vpack.c.bf16 %v121_v32, %v118_v29 }
  0xdd   :  { %v587_v34 = vpop.f32.mrf.mxu0 }
  0xde   :  { %598 = vmatpush3.bf16.msra.mxu1 %v181_v33 }
  0xdf   :  { %v134_v36 = vpop.f32.mrf.mxu0  ;;  %603 = vmatprep.subr.bf16.mxu1 %v698_v27 }
  0xe1   :  { %v588_v38 = vpop.f32.mrf.mxu0  ;;  %600 = vmatmul.mubr.msk.bf16.vlgmr.msra.gmra.mxu1 %vm59_vm0, %v58_v35 }
  0xe2   :  { %604 = vmatpush3.bf16.msra.mxu1 %v182_v37  ;;  %605 = vmatprep.mubr.msk.bf16.mxu1 %vm699_vm1, %v698_v27  ;;  %v184_v48 = vpack.c.bf16 %v588_v38, %v587_v34 }
  0xe3   :  { %v137_v39 = vpop.f32.mrf.mxu0  ;;  %609 = vmatprep.subr.bf16.mxu1 %v698_v27 }
  0xe4   :  { %v183_v41 = vpack.c.bf16 %v137_v39, %v134_v36 }
  0xe5   :  { %v591_v40 = vpop.f32.mrf.mxu0 }
  0xe7   :  { %v150_v42 = vpop.f32.mrf.mxu0 }
  0xe9   :  { %v592_v43 = vpop.f32.mrf.mxu0  ;;  %606 = vmatmul.mubr.msk.bf16.vlgmr.msra.gmra.mxu1 %vm59_vm0, %v58_v35 }
  0xea   :  { %610 = vmatpush3.bf16.msra.mxu1 %v183_v41  ;;  %611 = vmatprep.mubr.msk.bf16.mxu1 %vm699_vm1, %v698_v27  ;;  %v186_v52 = vpack.c.bf16 %v592_v43, %v591_v40 }
  0xeb   :  { %v153_v44 = vpop.f32.mrf.mxu0  ;;  %615 = vmatprep.subr.bf16.mxu1 %v698_v27 }
  0xec   :  { %v185_v45 = vpack.c.bf16 %v153_v44, %v150_v42 }
  0xed   :  { %v595_v46 = vpop.f32.mrf.mxu0 }
  0xee   :  { %622 = vmatpush3.bf16.msra.mxu0 %v185_v45 }
  0xef   :  { %v166_v47 = vpop.f32.mrf.mxu0  ;;  %633 = vmatprep.subr.bf16.mxu0 %v698_v27 }
  0xf1   :  { %612 = vmatmul.mubr.msk.bf16.vlgmr.msra.gmra.mxu1 %vm59_vm0, %v58_v35  ;;  %v596_v49 = vpop.f32.mrf.mxu0  ;;  %624 = vmatmul.mubr.msk.bf16.vlgmr.msra.gmra.mxu0 %vm59_vm0, %v58_v35 }
  0xf2   :  { %616 = vmatpush3.bf16.msra.mxu1 %v184_v48  ;;  %617 = vmatprep.mubr.msk.bf16.mxu1 %vm699_vm1, %v698_v27  ;;  %v188_v53 = vpack.c.bf16 %v596_v49, %v595_v46 }
  0xf3   :  { %627 = vmatprep.subr.bf16.mxu1 %v698_v27  ;;  %v169_v50 = vpop.f32.mrf.mxu0  ;;  %635 = vmatprep.mubr.msk.bf16.mxu0 %vm699_vm1, %v698_v27 }
  0xf4   :  { %v187_v51 = vpack.c.bf16 %v169_v50, %v166_v47 }
  0xf6   :  { %634 = vmatpush3.bf16.msra.mxu0 %v187_v51 }
  0xf9   :  { %618 = vmatmul.mubr.msk.bf16.vlgmr.msra.gmra.mxu1 %vm59_vm0, %v58_v35  ;;  %636 = vmatmul.mubr.msk.bf16.vlgmr.msra.gmra.mxu0 %vm59_vm0, %v58_v35 }
  0xfa   :  { %628 = vmatpush3.bf16.msra.mxu1 %v186_v52  ;;  %629 = vmatprep.mubr.msk.bf16.mxu1 %vm699_vm1, %v698_v27 }
  0xfb   :  { %639 = vmatprep.subr.bf16.mxu1 %v698_v27 }
 0x101   :  { %630 = vmatmul.mubr.msk.bf16.vlgmr.msra.gmra.mxu1 %vm59_vm0, %v58_v35 }
 0x102   :  { %640 = vmatpush3.bf16.msra.mxu1 %v188_v53  ;;  %641 = vmatprep.mubr.msk.bf16.mxu1 %vm699_vm1, %v698_v27 }
 0x109   :  { %642 = vmatmul.mubr.msk.bf16.vlgmr.msra.gmra.mxu1 %vm59_vm0, %v58_v35 }
 0x1a1   :  { %v226_v54 = vpop.f32.mrf.mxu1 }
 0x1a2   :  { %513 = vst.msk [vmem:[#allocation5] sm:$0xff] %vm512_vm2, %v226_v54 }
 0x1a3   :  { %v601_v55 = vpop.f32.mrf.mxu1 }
 0x1a5   :  { %v229_v56 = vpop.f32.mrf.mxu1 }
 0x1a7   :  { %v602_v57 = vpop.f32.mrf.mxu1 }
 0x1a9   :  { %v266_v58 = vpop.f32.mrf.mxu1 }
 0x1aa   :  { %514 = vst.msk [vmem:[#allocation5 + $0x8] sm:$0xff] %vm512_vm2, %v266_v58 }
 0x1ab   :  { %v607_v59 = vpop.f32.mrf.mxu1 }
 0x1ad   :  { %v269_v60 = vpop.f32.mrf.mxu1 }
 0x1af   :  { %v608_v61 = vpop.f32.mrf.mxu1 }
 0x1b1   :  { %v306_v62 = vpop.f32.mrf.mxu1  ;;  %v386_v63 = vpop.f32.mrf.mxu0 }
 0x1b2   :  { %515 = vst.msk [vmem:[#allocation5 + $0x10] sm:$0xff] %vm512_vm2, %v306_v62  ;;  %517 = vst.msk [vmem:[#allocation5 + $0x20] sm:$0xff] %vm512_vm2, %v386_v63 }
 0x1b3   :  { %v613_v0 = vpop.f32.mrf.mxu1  ;;  %v625_v1 = vpop.f32.mrf.mxu0 }
 0x1b5   :  { %v309_v2 = vpop.f32.mrf.mxu1  ;;  %v389_v3 = vpop.f32.mrf.mxu0 }
 0x1b7   :  { %v614_v4 = vpop.f32.mrf.mxu1  ;;  %v626_v5 = vpop.f32.mrf.mxu0 }
 0x1b9   :  { %v346_v6 = vpop.f32.mrf.mxu1  ;;  %v466_v7 = vpop.f32.mrf.mxu0 }
 0x1ba   :  { %516 = vst.msk [vmem:[#allocation5 + $0x18] sm:$0xff] %vm512_vm2, %v346_v6  ;;  %519 = vst.msk [vmem:[#allocation5 + $0x30] sm:$0xff] %vm512_vm2, %v466_v7 }
 0x1bb   :  { %v619_v8 = vpop.f32.mrf.mxu1  ;;  %v637_v9 = vpop.f32.mrf.mxu0 }
 0x1bd   :  { %v349_v10 = vpop.f32.mrf.mxu1  ;;  %v469_v11 = vpop.f32.mrf.mxu0 }
 0x1bf   :  { %v620_v12 = vpop.f32.mrf.mxu1  ;;  %v638_v13 = vpop.f32.mrf.mxu0 }
 0x1c1   :  { %v426_v14 = vpop.f32.mrf.mxu1 }
 0x1c2   :  { %518 = vst.msk [vmem:[#allocation5 + $0x28] sm:$0xff] %vm512_vm2, %v426_v14 }
 0x1c3   :  { %v631_v15 = vpop.f32.mrf.mxu1 }
 0x1c5   :  { %v429_v16 = vpop.f32.mrf.mxu1 }
 0x1c7   :  { %v632_v17 = vpop.f32.mrf.mxu1 }
 0x1c9   :  { %v506_v18 = vpop.f32.mrf.mxu1 }
 0x1ca   :  { %520 = vst.msk [vmem:[#allocation5 + $0x38] sm:$0xff] %vm512_vm2, %v506_v18 }
 0x1cb   :  { %v643_v19 = vpop.f32.mrf.mxu1 }
 0x1cc   :  { %682 = shalt.err (!%p679_p9)
}
 0x1cd   :  { %532 = dma.vmem_to_hbm [thread:$0]  %s527_s23, 1024, %s777_s3, [#allocation4], %s696_s15, %s696_s15, %s697_s16   ;;  %v509_v20 = vpop.f32.mrf.mxu1 }
 0x1cf   :  { %v644_v21 = vpop.f32.mrf.mxu1 }
 0x1d0   :  { %693 = dma.done.wait [#allocation4], 1024  }
 0x1d1   :  { %694 = vsyncadd [#allocation4], 4294966272 }
 0x1d2   :  { %536 = vsyncpa [#allocation3], 1 }
 0x1d3   :  { %537 = vsyncpa [#allocation4], 1 }

</bundles_post_ra>
